<compile_context>
chip_gen: v5e
topology: v5e:2x2
jax: 0.10.0
libtpu: 0.0.40
codegen_flags: <defaults>
</compile_context>

<pallas_src>
import math

import jax
import jax.numpy as jnp
from jax.experimental import pallas as pl
from jax.experimental.pallas import tpu as pltpu


def _fourier_kernel(x_ref, freqs_ref, phases_ref, o_ref):
    # x_ref:      (tn, 1)  input dtype  -- row tile of x
    # freqs_ref:  (1, D)   float32      -- resident
    # phases_ref: (1, D)   float32      -- resident
    # o_ref:      (tn, D)  output dtype -- one row tile per grid step
    x = x_ref[...].astype(jnp.float32)          # (tn, 1), x.float()
    f = freqs_ref[...]                          # (1, D)
    p = phases_ref[...]                         # (1, D)
    y = x * f + p                               # broadcast FMA on the VPU
    # Scale in f32 (Python-float constant), single cast at the lane-dense store.
    o_ref[...] = (jnp.cos(y) * math.sqrt(2.0)).astype(o_ref.dtype)


def _pick_row_tile(n: int, d: int, out_itemsize: int) -> int:
    # Sublane alignment for packed dtypes: 8 rows (f32), 16 (bf16), 32 (int8/fp8).
    row_align = max(8, 32 // max(out_itemsize, 1))
    # Size the tile by OUTPUT bytes: ~4 MiB per block. Double-buffered output
    # (8 MiB) + the lane-padded (tn, 1) x tiles stays comfortably under the
    # 32 MiB scoped-VMEM default on every generation (incl. v7x's 64 MiB VMEM).
    target_rows = max(row_align, (4 * 1024 * 1024) // max(d * out_itemsize, 1))
    # Don't tile wider than the (aligned) problem itself.
    n_aligned = ((n + row_align - 1) // row_align) * row_align
    tn = min(target_rows, n_aligned)
    tn = max(row_align, (tn // row_align) * row_align)
    # v7x has 2 TensorCores: keep >= 2 parallel grid blocks when possible so
    # the "parallel" row axis can shard across them (no-op on v5e/v6e).
    while pl.cdiv(n, tn) < 2 and tn > row_align:
        tn = max(row_align, ((tn // 2) // row_align) * row_align)
    return tn


def fourier(x: jax.Array, freqs: jax.Array, phases: jax.Array,
            *, tn: int | None = None) -> jax.Array:
    """x: (N,), freqs/phases: (D,). Returns (N, D) = cos(outer(x,f)+p).astype(x.dtype)*sqrt(2)."""
    N = x.shape[0]
    D = freqs.shape[0]
    out_dtype = x.dtype
    out_itemsize = jnp.dtype(out_dtype).itemsize

    # Keep the output last dim lane-dense (multiple of 128): pad columns of
    # freqs/phases if needed and slice them off afterwards (only pays the extra
    # copy when outp_dim is not already a multiple of 128).
    D_pad = ((D + 127) // 128) * 128
    f2 = freqs.astype(jnp.float32).reshape(1, D)
    p2 = phases.astype(jnp.float32).reshape(1, D)
    if D_pad != D:
        f2 = jnp.pad(f2, ((0, 0), (0, D_pad - D)))
        p2 = jnp.pad(p2, ((0, 0), (0, D_pad - D)))

    if tn is None:
        tn = _pick_row_tile(N, D_pad, out_itemsize)
    n_blocks = pl.cdiv(N, tn)       # ragged last block handled by Pallas

    x2 = x.reshape(N, 1)

    cost = pl.CostEstimate(
        flops=2 * N * D_pad,
        transcendentals=N * D_pad,
        bytes_accessed=(N * D_pad * out_itemsize
                        + N * jnp.dtype(x.dtype).itemsize
                        + 2 * D_pad * 4),
    )

    out = pl.pallas_call(
        _fourier_kernel,
        out_shape=jax.ShapeDtypeStruct((N, D_pad), out_dtype),
        grid_spec=pltpu.PrefetchScalarGridSpec(
            num_scalar_prefetch=0,
            grid=(n_blocks,),
            in_specs=[
                # x: one (tn, 1) row tile per grid step.
                pl.BlockSpec((tn, 1), lambda i: (i, 0)),
                # freqs / phases: full-width resident blocks (constant index).
                pl.BlockSpec((1, D_pad), lambda i: (0, 0)),
                pl.BlockSpec((1, D_pad), lambda i: (0, 0)),
            ],
            out_specs=pl.BlockSpec((tn, D_pad), lambda i: (i, 0)),
        ),
        compiler_params=pltpu.CompilerParams(
            dimension_semantics=("parallel",),
        ),
        cost_estimate=cost,
    )(x2, f2, p2)

    if D_pad != D:
        out = out[:, :D]
    return out


if __name__ == "__main__":
    key = jax.random.PRNGKey(0)
    k_x, k_f, k_p = jax.random.split(key, 3)

    N = 10          # number of input scalars (not a multiple of 8 -> exercises ragged tiles)
    D = 256         # outp_dim

    # Deterministic "buffers", mirroring __init__:
    #   freqs  = 2*pi*randn(outp_dim), phases = 2*pi*rand(outp_dim)
    freqs = 2.0 * math.pi * jax.random.normal(k_f, (D,), dtype=jnp.float32)
    phases = 2.0 * math.pi * jax.random.uniform(k_p, (D,), dtype=jnp.float32)

    x = jax.random.normal(k_x, (N,), dtype=jnp.float32)

    out = fourier(x, freqs, phases)
    jax.block_until_ready(out)

    # Reference check in plain JAX (same math as the PyTorch forward).
    ref = (jnp.cos(jnp.outer(x.astype(jnp.float32), freqs) + phases)
           .astype(x.dtype) * math.sqrt(2.0))
    assert out.shape == (N, D)
    assert jnp.allclose(out, ref, atol=1e-5, rtol=1e-5)

    # bf16 path (sqrt(2) applied in f32 before the cast; loose tolerance).
    xb = x.astype(jnp.bfloat16)
    out_b = fourier(xb, freqs, phases)
    jax.block_until_ready(out_b)
    ref_b = (jnp.cos(jnp.outer(xb.astype(jnp.float32), freqs) + phases)
             * math.sqrt(2.0)).astype(jnp.bfloat16)
    assert out_b.dtype == jnp.bfloat16
    assert jnp.allclose(out_b.astype(jnp.float32), ref_b.astype(jnp.float32),
                        atol=3e-2, rtol=3e-2)

    print("KERNEL_OK")
</pallas_src>

<mosaic_0001>
module attributes {stable_mosaic.version = 11 : i64} {
  func.func @_fourier_kernel(%arg0: i32, %arg1: memref<8x1xf32, #tpu.memory_space<vmem>>, %arg2: memref<1x256xf32, #tpu.memory_space<vmem>>, %arg3: memref<1x256xf32, #tpu.memory_space<vmem>>, %arg4: memref<8x256xf32, #tpu.memory_space<vmem>>) attributes {dimension_semantics = [#tpu.dimension_semantics<parallel>], iteration_bounds = array<i64: 2>, scalar_prefetch = 0 : i64, scratch_operands = 0 : i64, tpu.core_type = #tpu.core_type<tc>, window_params = [{transform_indices = @transform_0, window_bounds = array<i64: 8, 1>}, {pipeline_mode = #tpu.pipeline_mode<synchronous>, transform_indices = @transform_1, window_bounds = array<i64: 1, 256>}, {pipeline_mode = #tpu.pipeline_mode<synchronous>, transform_indices = @transform_2, window_bounds = array<i64: 1, 256>}, {transform_indices = @transform_3, window_bounds = array<i64: 8, 256>}]} {
    %c0 = arith.constant 0 : index
    %c0_0 = arith.constant 0 : index
    %0 = vector.load %arg1[%c0, %c0_0] : memref<8x1xf32, #tpu.memory_space<vmem>>, vector<8x1xf32>
    %c0_1 = arith.constant 0 : index
    %c0_2 = arith.constant 0 : index
    %1 = vector.load %arg2[%c0_1, %c0_2] : memref<1x256xf32, #tpu.memory_space<vmem>>, vector<1x256xf32>
    %c0_3 = arith.constant 0 : index
    %c0_4 = arith.constant 0 : index
    %2 = vector.load %arg3[%c0_3, %c0_4] : memref<1x256xf32, #tpu.memory_space<vmem>>, vector<1x256xf32>
    %3 = vector.broadcast %0 : vector<8x1xf32> to vector<8x256xf32>
    %4 = vector.broadcast %1 : vector<1x256xf32> to vector<8x256xf32>
    %5 = arith.mulf %3, %4 : vector<8x256xf32>
    %6 = vector.broadcast %2 : vector<1x256xf32> to vector<8x256xf32>
    %7 = arith.addf %5, %6 : vector<8x256xf32>
    %8 = math.cos %7 : vector<8x256xf32>
    %cst = arith.constant 1.41421354 : f32
    %9 = vector.broadcast %cst : f32 to vector<8x256xf32>
    %10 = arith.mulf %8, %9 : vector<8x256xf32>
    %c0_5 = arith.constant 0 : index
    %c0_6 = arith.constant 0 : index
    %11 = vector.load %arg4[%c0_5, %c0_6] : memref<8x256xf32, #tpu.memory_space<vmem>>, vector<8x256xf32>
    tpu.vector_store %arg4[%c0_5, %c0_6], %10 {strides = array<i32>} : memref<8x256xf32, #tpu.memory_space<vmem>>, vector<8x256xf32>,
    return
  }
  func.func @transform_0(%arg0: i32) -> (i32, i32) {
    %c0_i32 = arith.constant 0 : i32
    %c0_i32_0 = arith.constant 0 : i32
    return %arg0, %c0_i32 : i32, i32
  }
  func.func @transform_1(%arg0: i32) -> (i32, i32) {
    %c0_i32 = arith.constant 0 : i32
    %c0_i32_0 = arith.constant 0 : i32
    %c0_i32_1 = arith.constant 0 : i32
    return %c0_i32, %c0_i32_0 : i32, i32
  }
  func.func @transform_2(%arg0: i32) -> (i32, i32) {
    %c0_i32 = arith.constant 0 : i32
    %c0_i32_0 = arith.constant 0 : i32
    %c0_i32_1 = arith.constant 0 : i32
    return %c0_i32, %c0_i32_0 : i32, i32
  }
  func.func @transform_3(%arg0: i32) -> (i32, i32) {
    %c0_i32 = arith.constant 0 : i32
    %c0_i32_0 = arith.constant 0 : i32
    return %arg0, %c0_i32 : i32, i32
  }
}

</mosaic_0001>

<bundles_post_ra>
// kernel: tpu_custom_call.1
= control target key start
LH: loop header
LB: loop body
LE: loop exit
PB: predicated region body
PF: predicated region fallthrough
CT: control target
= control target key end

     0   :  { %8 = vsyncpa [#allocation3], 0  ;;  %s1019_s0 = inlined_call_operand.vmem [shape: f32[10,1], index: 0, kind: input, shape index: {}]   ;;  %s1020_s1 = inlined_call_operand.vmem [shape: f32[1,256], index: 1, kind: input, shape index: {}]   ;;  %s1021_s2 = inlined_call_operand.vmem [shape: f32[1,256], index: 2, kind: input, shape index: {}]   ;;  %s1022_s3 = inlined_call_operand.hbm [shape: f32[10,256], index: 3, kind: output, shape index: {}]  }
   0x1   :  { %10 = vsyncpa [#allocation3 + $0x1], 0  ;;  %s732_s12 = smov 0   ;;  %s734_s13 = smov 0  }
   0x2   :  { %s736_s14 = smov 0   ;;  %s738_s15 = smov 0  }
   0x3 LB: > { %s753_s16 = sadd.s32 4294967295, %s703_s15   ;;  %s576_s17 = sadd.s32 4294967294, %s703_s15   ;;  %s703_s15 = sphi %s738_s15, %s1032_s15   ;;  %s699_s14 = sphi %s736_s14, %s1031_s14   ;;  %s695_s13 = sphi %s734_s13, %s1030_s13   ;;  %s691_s12 = sphi %s732_s12, %s1029_s12  }
   0x4   : > { %s757_s18 = sadd.s32 1, %s703_s15   ;;  %s91_s19 = sadd.s32 1, %s699_s14 }
   0x5   : > { %s88_s20 = ssub.s32 %s703_s15, %s757_s18  ;;  %p101_p0 = scmp.ne.s32.totalorder %s699_s14, %s695_s13 }
   0x6   : > { %p89_p1 = scmp.eq.s32.totalorder %s88_s20, 0  ;;  %p102_p2 = scmp.eq.s32.totalorder %s753_s16, 1 }
   0x7   : > { %p107_p3 = scmp.ne.s32.totalorder %s695_s13, %s691_s12  ;;  %p108_p4 = scmp.eq.s32.totalorder %s576_s17, 1 }
   0x8   : > { %s768_s21 = scalar_select %p89_p1, %s699_s14, %s91_s19  }
   0x9   : > { %p770_p5 = por %p102_p2, %p101_p0  ;;  %p774_p6 = por %p108_p4, %p107_p3 }
   0xa   : > { %p579_p7 = scmp.ge.s32.totalorder %s703_s15, 1  ;;  %p139_p8 = scmp.lt.s32.totalorder %s703_s15, 3 }
   0xc   : > { %p140_p9 = pnand %p579_p7, %p139_p8 }
   0xd   : > { %p162_p10 = scmp.lt.s32.totalorder (!%p140_p9), %s753_s16, 1  ;;  %s159_s6 = sand.u32 (!%p140_p9), 1, %s695_s13  }
   0xe   : > { %143 = sbr.rel (%p140_p9) target bundleno = 261 (0x105), region = 32  ;;  %s580_s7 = sshll.u32 (!%p140_p9), %s159_s6, 4 }
   0xf   : > { %s975_s8 = scalar_lea.vmem (!%p140_p9), [#allocation2], %s580_s7  ;;  %s593_s9 = sshll.u32 (!%p140_p9), %s753_s16, 4 }
  0x10   : > { %s512_s17 = scalar_lea.hbm (!%p140_p9), %s1022_s3, %s593_s9  ;;  %s514_s19 = sshll.u32 (!%p140_p9), %s975_s8, 4  ;;  %s515_s19 = int_to_ptr.vmem [resolvable:$true] %s514_s19 }
  0x11   : > { %s516_s20 = sshll.u32 (!%p140_p9), %s512_s17, 4  ;;  %s517_s20 = int_to_ptr.hbm [resolvable:$true] %s516_s20 }
  0x13   : > { %v705_v0 = vmov 0   ;;  %s163_s24 = scalar_select %p162_p10, %s753_s16, 1  ;;  %v167_v2 = vld [vmem:[%s1020_s1] sm:$0x3]  ;;  %v706_v36 = vmov 683565275  }
  0x14   : > { %640 = vset.pattern.permute.xlu0 %v705_v0  ;;  %v168_v3 = vld [vmem:[%s1021_s2] sm:$0x3]  ;;  %v175_v4 = vperm.slane %v167_v2, 0  ;;  %v176_v5 = vperm.slane %v167_v2, 1  ;;  %v707_v38 = vmov 2475754826  }
  0x15   : > { %s581_s25 = sshll.u32 %s163_s24, 3  ;;  %v182_v6 = vperm.slane %v168_v3, 0  ;;  %v183_v7 = vperm.slane %v168_v3, 1  ;;  %v708_v42 = vmov 2131351028   ;;  %s501_s16 = scalar_lea.sflag [#allocation3], %s159_s6 }
  0x16   : > { %s165_s28 = scalar_lea.vmem %s1019_s0, %s581_s25  ;;  %v709_v45 = vmov 2102212464   ;;  %v710_v48 = vmov 920167782   ;;  %v711_v51 = vmov 1326507024  }
  0x17   : > { %v166_v1 = vld [vmem:[%s165_s28] sm:$0xff]  ;;  %s655_s24 = sshra.s32 %s517_s20, 4  ;;  %s661_s28 = scalar_lea.hbm %s1022_s3, 32  ;;  %s656_s24 = int_to_ptr.hbm [resolvable:$true] %s655_s24 }
  0x18   : > { %171 = vperm.xlu0 %640, %v166_v1   ;;  %s657_s25 = scalar_lea.hbm %s656_s24, 16  ;;  %p662_p0 = scmp.lt.s32.totalorder %s656_s24, %s1022_s3 }
  0x19   : > { %p658_p11 = scmp.ne.s32.totalorder %s656_s24, %s657_s25  ;;  %p663_p1 = scmp.lt.s32.totalorder %s661_s28, %s657_s25 }
  0x1b   : > { %p659_p12 = pnand %p658_p11, %p770_p5  ;;  %p664_p2 = por %p663_p1, %p662_p0 }
  0x1d   : > { %p660_p13 = pneg %p659_p12 }
  0x1f   : > { %p665_p3 = pnand %p664_p2, %p660_p13 }
  0x8a   : > { %v172_v8 = vpop.permute.xlu0 %171 }
  0x8b   : > { %v179_v9 = vmul.f32 %v175_v4, %v172_v8  ;;  %v180_v10 = vmul.f32 %v176_v5, %v172_v8 }
  0x8d   : > { %v792_v11 = vadd.f32 %v182_v6, %v179_v9  ;;  %v794_v12 = vadd.f32 %v183_v7, %v180_v10 }
  0x8f   : > { %v188_v13 = vand.u32 2147483647, %v792_v11  ;;  %v191_v14 = vand.u32 2139095040, %v792_v11  ;;  %v342_v15 = vand.u32 2147483647, %v794_v12  ;;  %v345_v16 = vand.u32 2139095040, %v794_v12 }
  0x91   : > { %v192_v17 = vshrl.u32 %v191_v14, 23  ;;  %v195_v18 = vand.u32 8388607, %v188_v13  ;;  %v346_v19 = vshrl.u32 %v345_v16, 23  ;;  %v349_v22 = vand.u32 8388607, %v342_v15 }
  0x93   : > { %v582_v20 = vadd.s32 4294967169, %v192_v17  ;;  %v196_v21 = vor.u32 8388608, %v195_v18  ;;  %v585_v23 = vadd.s32 4294967169, %v346_v19  ;;  %v350_v27 = vor.u32 8388608, %v349_v22 }
  0x95   : > { %v198_v24 = vadd.s32 1, %v582_v20  ;;  %v352_v25 = vadd.s32 1, %v585_v23  ;;  %v804_v26 = vshll.u32 %v196_v21, 8  ;;  %v811_v34 = vshll.u32 %v350_v27, 8 }
  0x97   : > { %vm199_vm0 = vcmp.gt.s32.totalorder %v198_v24, 0  ;;  %vm353_vm1 = vcmp.gt.s32.totalorder %v352_v25, 0  ;;  %v807_v32 = vand.u32 65535, %v804_v26  ;;  %v238_v40 = vshrl.u32 %v804_v26, 16 }
  0x98   : > { %v200_v28 = vsel %vm199_vm0, %v198_v24, 0  ;;  %v354_v30 = vsel %vm353_vm1, %v352_v25, 0 }
  0x99   : > { %v202_v29 = vand.u32 31, %v200_v28  ;;  %v809_v33 = vand.u32 31, %v354_v30  ;;  %v813_v35 = vshrl.u32 %v200_v28, 5  ;;  %v851_v20 = vshrl.u32 %v354_v30, 5 }
  0x9b   : > { %v203_v31 = vsub.s32 32, %v202_v29  ;;  %v205_v37 = vshll.u32 %v706_v36, %v202_v29  ;;  %v208_v39 = vshll.u32 %v707_v38, %v202_v29  ;;  %v211_v44 = vshll.u32 %v708_v42, %v202_v29 }
  0x9c   : > { %v214_v47 = vshll.u32 %v709_v45, %v202_v29  ;;  %v217_v50 = vshll.u32 %v710_v48, %v202_v29  ;;  %v823_v56 = vsub.s32 32, %v809_v33  ;;  %vm220_vm2 = vcmp.lt.s32.totalorder %v813_v35, 1 }
  0x9d   : > { %v206_v41 = vshrl.u32 %v707_v38, %v203_v31  ;;  %v209_v43 = vshrl.u32 %v708_v42, %v203_v31  ;;  %v212_v46 = vshrl.u32 %v709_v45, %v203_v31  ;;  %v215_v49 = vshrl.u32 %v710_v48, %v203_v31 }
  0x9e   : > { %v218_v52 = vshrl.u32 %v711_v51, %v203_v31  ;;  %vm221_vm3 = vcmp.lt.s32.totalorder %v813_v35, 2  ;;  %v204_v59 = vshrl.u32 %v706_v36, %v203_v31  ;;  %vm223_vm4 = vcmp.lt.s32.totalorder %v813_v35, 4 }
  0x9f   : > { %v207_v53 = vor.u32 %v206_v41, %v205_v37  ;;  %v210_v54 = vor.u32 %v209_v43, %v208_v39  ;;  %v213_v55 = vor.u32 %v212_v46, %v211_v44  ;;  %v216_v57 = vor.u32 %v215_v49, %v214_v47 }
  0xa0   : > { %v219_v58 = vor.u32 %v218_v52, %v217_v50  ;;  %vm222_vm5 = vcmp.lt.s32.totalorder %v813_v35, 3  ;;  %v359_v1 = vshll.u32 %v706_v36, %v809_v33  ;;  %v360_v5 = vshrl.u32 %v707_v38, %v823_v56 }
  0xa1   : > { %v228_v60 = vsel %vm220_vm2, %v207_v53, %v210_v54  ;;  %v232_v61 = vsel %vm220_vm2, %v210_v54, %v213_v55  ;;  %v229_v62 = vsel %vm223_vm4, %v216_v57, 920167782  ;;  %v225_v2 = vsel %vm223_vm4, %v213_v55, 2102212464 }
  0xa2   : > { %v233_v63 = vsel %vm223_vm4, %v219_v58, 1326507024  ;;  %v230_v3 = vsel %vm222_vm5, %v213_v55, %v229_v62  ;;  %v362_v8 = vshll.u32 %v707_v38, %v809_v33  ;;  %v363_v9 = vshrl.u32 %v708_v42, %v823_v56 }
  0xa3   : > { %v234_v4 = vsel %vm222_vm5, %v216_v57, %v233_v63  ;;  %v231_v6 = vsel %vm221_vm3, %v228_v60, %v230_v3  ;;  %v224_v18 = vsel %vm220_vm2, %v204_v59, %v207_v53  ;;  %v226_v19 = vsel %vm222_vm5, %v210_v54, %v225_v2 }
  0xa4   : > { %v235_v7 = vsel %vm221_vm3, %v232_v61, %v234_v4  ;;  %v261_v16 = vand.u32 65535, %v231_v6  ;;  %v262_v17 = vshrl.u32 %v231_v6, 16  ;;  %v853_v21 = vor.u32 %v360_v5, %v359_v1 }
  0xa5   : > { %v239_v10 = vand.u32 65535, %v235_v7  ;;  %v240_v14 = vshrl.u32 %v235_v7, 16  ;;  %v856_v24 = vor.u32 %v363_v9, %v362_v8  ;;  %v366_v25 = vshrl.u32 %v709_v45, %v823_v56 }
  0xa6   : > { %v264_v28 = vmul.u32 %v262_v17, %v807_v32  ;;  %v265_v29 = vmul.u32 %v261_v16, %v238_v40  ;;  %v365_v31 = vshll.u32 %v708_v42, %v809_v33  ;;  %v263_v38 = vmul.u32 %v261_v16, %v807_v32 }
  0xa7   : > { %v242_v22 = vmul.u32 %v240_v14, %v807_v32  ;;  %v243_v23 = vmul.u32 %v239_v10, %v238_v40  ;;  %v241_v27 = vmul.u32 %v239_v10, %v807_v32  ;;  %v244_v37 = vmul.u32 %v240_v14, %v238_v40 }
  0xa8   : > { %v266_v39 = vmul.u32 %v262_v17, %v238_v40  ;;  %v267_v46 = vshll.u32 %v264_v28, 16  ;;  %v269_v49 = vshll.u32 %v265_v29, 16  ;;  %v864_v50 = vor.u32 %v366_v25, %v365_v31 }
  0xa9   : > { %v245_v30 = vshll.u32 %v242_v22, 16  ;;  %v246_v41 = vshrl.u32 %v242_v22, 16  ;;  %v247_v43 = vshll.u32 %v243_v23, 16  ;;  %v248_v44 = vshrl.u32 %v243_v23, 16 }
  0xaa   : > { %vm271_vm7 = vc.u32 %v263_v38, %v267_v46  ;;  %v273_v53 = vadd.s32 %v267_v46, %v263_v38  ;;  %v369_v42 = vshrl.u32 %v710_v48, %v823_v56  ;;  %v368_v40 = vshll.u32 %v709_v45, %v809_v33 }
  0xab   : > { %vm249_vm6 = vc.u32 %v241_v27, %v245_v30  ;;  %v251_v47 = vadd.s32 %v245_v30, %v241_v27  ;;  %v272_v32 = vsel %vm271_vm7, 1, %v705_v0  ;;  %v371_v58 = vshll.u32 %v710_v48, %v809_v33 }
  0xac   : > { %v250_v52 = vsel %vm249_vm6, 1, %v705_v0  ;;  %v274_v57 = vadd.s32 %v272_v32, %v266_v39  ;;  %vm275_vm9 = vc.u32 %v273_v53, %v269_v49  ;;  %v370_v61 = vor.u32 %v369_v42, %v368_v40 }
  0xad   : > { %v252_v54 = vadd.s32 %v250_v52, %v244_v37  ;;  %vm253_vm8 = vc.u32 %v251_v47, %v247_v43  ;;  %v276_v60 = vsel %vm275_vm9, 1, %v705_v0  ;;  %v372_v62 = vshrl.u32 %v711_v51, %v823_v56 }
  0xae   : > { %v254_v55 = vsel %vm253_vm8, 1, %v705_v0  ;;  %v268_v63 = vshrl.u32 %v264_v28, 16  ;;  %v270_v1 = vshrl.u32 %v265_v29, 16  ;;  %v878_v2 = vadd.s32 %v273_v53, %v269_v49 }
  0xaf   : > { %v256_v59 = vadd.s32 %v254_v55, %v252_v54  ;;  %v278_v3 = vadd.s32 %v276_v60, %v274_v57  ;;  %v373_v4 = vor.u32 %v372_v62, %v371_v58  ;;  %vm374_vm10 = vcmp.lt.s32.totalorder %v851_v20, 1 }
  0xb0   : > { %vm377_vm11 = vcmp.lt.s32.totalorder %v851_v20, 4  ;;  %vm376_vm12 = vcmp.lt.s32.totalorder %v851_v20, 3  ;;  %v382_v33 = vsel %vm374_vm10, %v853_v21, %v856_v24  ;;  %vm375_vm13 = vcmp.lt.s32.totalorder %v851_v20, 2 }
  0xb1   : > { %v257_v45 = vadd.s32 %v256_v59, %v246_v41  ;;  %v279_v5 = vadd.s32 %v278_v3, %v268_v63  ;;  %v383_v48 = vsel %vm377_vm11, %v370_v61, 920167782  ;;  %v386_v7 = vsel %vm374_vm10, %v856_v24, %v864_v50 }
  0xb2   : > { %v384_v6 = vsel %vm376_vm12, %v864_v50, %v383_v48  ;;  %v227_v8 = vsel %vm221_vm3, %v224_v18, %v226_v19  ;;  %v387_v14 = vsel %vm377_vm11, %v373_v4, 1326507024  ;;  %v391_v17 = vand.u32 65535, %v811_v34 }
  0xb3   : > { %v889_v51 = vadd.s32 %v257_v45, %v248_v44  ;;  %v280_v9 = vadd.s32 %v279_v5, %v270_v1  ;;  %v385_v10 = vsel %vm375_vm13, %v382_v33, %v384_v6  ;;  %v388_v16 = vsel %vm376_vm12, %v370_v61, %v387_v14 }
  0xb4   : > { %v415_v22 = vand.u32 65535, %v385_v10  ;;  %v389_v35 = vsel %vm375_vm13, %v386_v7, %v388_v16  ;;  %v392_v18 = vshrl.u32 %v811_v34, 16  ;;  %v416_v19 = vshrl.u32 %v385_v10, 16 }
  0xb5   : > { %vm283_vm14 = vc.u32 %v889_v51, %v878_v2  ;;  %v284_v23 = vadd.s32 1, %v280_v9  ;;  %v281_v25 = vmul.u32 %v804_v26, %v227_v8  ;;  %v393_v27 = vand.u32 65535, %v389_v35 }
  0xb6   : > { %v394_v28 = vshrl.u32 %v389_v35, 16  ;;  %v418_v31 = vmul.u32 %v416_v19, %v391_v17  ;;  %v419_v37 = vmul.u32 %v415_v22, %v392_v18  ;;  %v417_v41 = vmul.u32 %v415_v22, %v391_v17 }
  0xb7   : > { %v285_v29 = vsel %vm283_vm14, %v284_v23, %v280_v9  ;;  %v397_v39 = vmul.u32 %v393_v27, %v392_v18  ;;  %v420_v43 = vmul.u32 %v416_v19, %v392_v18  ;;  %v395_v47 = vmul.u32 %v393_v27, %v391_v17 }
  0xb8   : > { %v286_v30 = vadd.s32 %v285_v29, %v281_v25  ;;  %v396_v38 = vmul.u32 %v394_v28, %v391_v17  ;;  %v421_v44 = vshll.u32 %v418_v31, 16  ;;  %v398_v49 = vmul.u32 %v394_v28, %v392_v18 }
  0xb9   : > { %v401_v53 = vshll.u32 %v397_v39, 16  ;;  %v423_v42 = vshll.u32 %v419_v37, 16  ;;  %v379_v59 = vsel %vm377_vm11, %v864_v50, 2102212464  ;;  %v358_v61 = vshrl.u32 %v706_v36, %v823_v56 }
  0xba   : > { %v287_v46 = vadd.s32 536870912, %v286_v30  ;;  %v399_v52 = vshll.u32 %v396_v38, 16  ;;  %vm425_vm15 = vc.u32 %v417_v41, %v421_v44  ;;  %v427_v54 = vadd.s32 %v421_v44, %v417_v41 }
  0xbb   : > { %v426_v40 = vsel %vm425_vm15, 1, %v705_v0  ;;  %v400_v3 = vshrl.u32 %v396_v38, 16  ;;  %v378_v5 = vsel %vm374_vm10, %v358_v61, %v853_v21  ;;  %v380_v50 = vsel %vm376_vm12, %v856_v24, %v379_v59 }
  0xbc   : > { %v914_v26 = vshrl.u32 %v287_v46, 30  ;;  %vm403_vm0 = vc.u32 %v395_v47, %v399_v52  ;;  %v405_v32 = vadd.s32 %v399_v52, %v395_v47  ;;  %v428_v57 = vadd.s32 %v426_v40, %v420_v43 }
  0xbd   : > { %v404_v55 = vsel %vm403_vm0, 1, %v705_v0  ;;  %vm429_vm1 = vc.u32 %v427_v54, %v423_v42  ;;  %v422_v33 = vshrl.u32 %v418_v31, 16  ;;  %v402_v56 = vshrl.u32 %v397_v39, 16 }
  0xbe   : > { %v289_v58 = vshll.u32 %v914_v26, 30  ;;  %v406_v60 = vadd.s32 %v404_v55, %v398_v49  ;;  %vm407_vm2 = vc.u32 %v405_v32, %v401_v53  ;;  %v430_v63 = vsel %vm429_vm1, 1, %v705_v0 }
  0xbf   : > { %v408_v62 = vsel %vm407_vm2, 1, %v705_v0  ;;  %v432_v4 = vadd.s32 %v430_v63, %v428_v57  ;;  %v424_v6 = vshrl.u32 %v419_v37, 16  ;;  %v381_v8 = vsel %vm375_vm13, %v378_v5, %v380_v50 }
  0xc0   : > { %v290_v1 = vsub.s32 %v286_v30, %v289_v58  ;;  %v410_v45 = vadd.s32 %v408_v62, %v406_v60  ;;  %v431_v14 = vadd.s32 %v427_v54, %v423_v42  ;;  %v435_v24 = vmul.u32 %v811_v34, %v381_v8 }
  0xc1   : > { %v433_v7 = vadd.s32 %v432_v4, %v422_v33  ;;  %v282_v18 = vadd.s32 %v878_v2, %v889_v51  ;;  %vm190_vm7 = vcmp.lt.s32.totalorder %v792_v11, 0  ;;  %vm943_vm8 = vcmp.le.f32.partialorder %v188_v13, 0.7853982 }
  0xc2   : > { %vm291_vm3 = vcmp.lt.s32.totalorder %v290_v1, 0  ;;  %v292_v48 = vsub.s32 0, %v290_v1  ;;  %v411_v36 = vadd.s32 %v410_v45, %v400_v3  ;;  %v312_v13 = vsub.s32 4, %v914_v26 }
  0xc3   : > { %v434_v16 = vadd.s32 %v433_v7, %v424_v6  ;;  %vm344_vm10 = vcmp.lt.s32.totalorder %v794_v12, 0  ;;  %vm964_vm13 = vcmp.le.f32.partialorder %v342_v15, 0.7853982  ;;  %vm331_vm15 = vweird.f32 %v792_v11 }
  0xc4   : > { %v293_v0 = vsel %vm291_vm3, %v292_v48, %v290_v1  ;;  %v412_v10 = vadd.s32 %v411_v36, %v402_v56  ;;  %v313_v4 = vsel %vm190_vm7, %v312_v13, %v914_v26  ;;  %vm485_vm3 = vweird.f32 %v794_v12 }
  0xc5   : > { %v294_v9 = vclz %v293_v0  ;;  %v438_v17 = vadd.s32 1, %v434_v16  ;;  %v315_v56 = vsel %vm943_vm8, 0, %v313_v4 }
  0xc6   : > { %vm437_vm4 = vc.u32 %v412_v10, %v431_v14  ;;  %v436_v57 = vadd.s32 %v431_v14, %v412_v10  ;;  %v332_v14 = vand.u32 3, %v315_v56 }
  0xc7   : > { %v583_v21 = vadd.s32 4294967294, %v294_v9  ;;  %v439_v22 = vsel %vm437_vm4, %v438_v17, %v434_v16 }
  0xc8   : > { %v440_v35 = vadd.s32 %v439_v22, %v435_v24  ;;  %vm334_vm11 = vcmp.eq.s32.totalorder %v332_v14, 0  ;;  %vm337_vm12 = vcmp.eq.s32.totalorder %v332_v14, 2  ;;  %vm333_vm14 = vcmp.lt.s32.totalorder %v332_v14, 2 }
  0xc9   : > { %vm584_vm5 = vcmp.lt.s32.totalorder %v583_v21, 0 }
  0xca   : > { %v297_v23 = vsel %vm584_vm5, 0, %v583_v21  ;;  %v441_v20 = vadd.s32 536870912, %v440_v35 }
  0xcb   : > { %v298_v19 = vsub.s32 32, %v297_v23  ;;  %v302_v25 = vsub.s32 4294967266, %v297_v23  ;;  %v299_v27 = vshll.u32 %v290_v1, %v297_v23 }
  0xcc   : > { %v937_v31 = vshrl.u32 %v441_v20, 30 }
  0xcd   : > { %v300_v28 = vshrl.u32 %v282_v18, %v298_v19  ;;  %v303_v29 = vadd.s32 127, %v302_v25 }
  0xce   : > { %v443_v38 = vshll.u32 %v937_v31, 30 }
  0xcf   : > { %v301_v37 = vor.u32 %v300_v28, %v299_v27  ;;  %v304_v30 = vshll.u32 %v303_v29, 23 }
  0xd0   : > { %v444_v39 = vsub.s32 %v440_v35, %v443_v38 }
  0xd1   : > { %v305_v34 = vor.u32 4788187, %v304_v30  ;;  %v308_v43 = vcvt.s32.f32 %v301_v37  ;;  %v466_v37 = vsub.s32 4, %v937_v31 }
  0xd2   : > { %vm445_vm6 = vcmp.lt.s32.totalorder %v444_v39, 0  ;;  %v446_v44 = vsub.s32 0, %v444_v39 }
  0xd3   : > { %v306_v41 = vand.u32 2147483647, %v305_v34 }
  0xd4   : > { %v447_v2 = vsel %vm445_vm6, %v446_v44, %v444_v39 }
  0xd5   : > { %v309_v46 = vmul.f32 %v308_v43, %v306_v41  ;;  %v448_v47 = vclz %v447_v2 }
  0xd7   : > { %v310_v51 = vxor.u32 2147483648, %v309_v46  ;;  %v586_v53 = vadd.s32 4294967294, %v448_v47 }
  0xd9   : > { %v311_v52 = vsel %vm190_vm7, %v310_v51, %v309_v46  ;;  %vm587_vm9 = vcmp.lt.s32.totalorder %v586_v53, 0 }
  0xda   : > { %v314_v42 = vsel %vm943_vm8, %v792_v11, %v311_v52  ;;  %v451_v32 = vsel %vm587_vm9, 0, %v586_v53  ;;  %v467_v11 = vsel %vm344_vm10, %v466_v37, %v937_v31 }
  0xdb   : > { %v316_v54 = vmul.f32 %v314_v42, %v314_v42  ;;  %v452_v58 = vsub.s32 32, %v451_v32  ;;  %v456_v59 = vsub.s32 4294967266, %v451_v32  ;;  %v453_v63 = vshll.u32 %v444_v39, %v451_v32 }
  0xdc   : > { %v469_v44 = vsel %vm964_vm13, 0, %v467_v11 }
  0xdd   : > { %v317_v40 = vmul.f32 -0.001358992, %v316_v54  ;;  %v324_v55 = vmul.f32 -0.00019511016, %v316_v54  ;;  %v454_v62 = vshrl.u32 %v436_v57, %v452_v58  ;;  %v457_v1 = vadd.s32 127, %v456_v59 }
  0xde   : > { %v486_v49 = vand.u32 3, %v469_v44 }
  0xdf   : > { %v318_v60 = vadd.f32 0.041655596, %v317_v40  ;;  %v325_v61 = vadd.f32 0.008332121, %v324_v55  ;;  %v455_v5 = vor.u32 %v454_v62, %v453_v63  ;;  %v458_v50 = vshll.u32 %v457_v1, 23 }
  0xe0   : > { %vm488_vm0 = vcmp.eq.s32.totalorder %v486_v49, 0  ;;  %vm491_vm1 = vcmp.eq.s32.totalorder %v486_v49, 2  ;;  %vm487_vm2 = vcmp.lt.s32.totalorder %v486_v49, 2 }
  0xe1   : > { %v319_v3 = vmul.f32 %v318_v60, %v316_v54  ;;  %v326_v45 = vmul.f32 %v325_v61, %v316_v54  ;;  %v459_v36 = vor.u32 4788187, %v458_v50  ;;  %v462_v8 = vcvt.s32.f32 %v455_v5 }
  0xe3   : > { %v320_v33 = vadd.f32 -0.4999988, %v319_v3  ;;  %v327_v48 = vadd.f32 -0.16666654, %v326_v45  ;;  %v460_v0 = vand.u32 2147483647, %v459_v36 }
  0xe5   : > { %v321_v6 = vmul.f32 %v320_v33, %v316_v54  ;;  %v328_v7 = vmul.f32 %v327_v48, %v316_v54  ;;  %v463_v16 = vmul.f32 %v462_v8, %v460_v0 }
  0xe7   : > { %v322_v9 = vadd.f32 1.0, %v321_v6  ;;  %v329_v10 = vadd.f32 1.0, %v328_v7  ;;  %v464_v17 = vxor.u32 2147483648, %v463_v16 }
  0xe9   : > { %v330_v21 = vmul.f32 %v329_v10, %v314_v42  ;;  %v338_v26 = vxor.u32 2147483648, %v322_v9  ;;  %v465_v23 = vsel %vm344_vm10, %v464_v17, %v463_v16 }
  0xea   : > { %v468_v19 = vsel %vm964_vm13, %v794_v12, %v465_v23 }
  0xeb   : > { %v335_v24 = vxor.u32 2147483648, %v330_v21  ;;  %v339_v18 = vsel %vm337_vm12, %v338_v26, %v330_v21  ;;  %v470_v20 = vmul.f32 %v468_v19, %v468_v19 }
  0xed   : > { %v336_v35 = vsel %vm334_vm11, %v322_v9, %v335_v24  ;;  %v471_v28 = vmul.f32 -0.001358992, %v470_v20  ;;  %v478_v15 = vmul.f32 -0.00019511016, %v470_v20 }
  0xee   : > { %v340_v25 = vsel %vm333_vm14, %v336_v35, %v339_v18 }
  0xef   : > { %v341_v27 = vsel %vm331_vm15, nan, %v340_v25  ;;  %v472_v30 = vadd.f32 0.041655596, %v471_v28  ;;  %v479_v38 = vadd.f32 0.008332121, %v478_v15 }
  0xf0   : > { %v496_v29 = vmul.f32 1.4142135, %v341_v27 }
  0xf1   : > { %v473_v34 = vmul.f32 %v472_v30, %v470_v20  ;;  %v480_v39 = vmul.f32 %v479_v38, %v470_v20 }
  0xf2   : > { %498 = vst [vmem:[%s975_s8] sm:$0xff] %v496_v29 }
  0xf3   : > { %v474_v41 = vadd.f32 -0.4999988, %v473_v34  ;;  %v481_v43 = vadd.f32 -0.16666654, %v480_v39 }
  0xf5   : > { %v475_v46 = vmul.f32 %v474_v41, %v470_v20  ;;  %v482_v2 = vmul.f32 %v481_v43, %v470_v20 }
  0xf7   : > { %v476_v51 = vadd.f32 1.0, %v475_v46  ;;  %v483_v47 = vadd.f32 1.0, %v482_v2 }
  0xf9   : > { %v484_v52 = vmul.f32 %v483_v47, %v468_v19  ;;  %v492_v53 = vxor.u32 2147483648, %v476_v51 }
  0xfb   : > { %v489_v31 = vxor.u32 2147483648, %v484_v52  ;;  %v493_v54 = vsel %vm491_vm1, %v492_v53, %v484_v52 }
  0xfd   : > { %v490_v42 = vsel %vm488_vm0, %v476_v51, %v489_v31 }
  0xfe   : > { %v494_v32 = vsel %vm487_vm2, %v490_v42, %v493_v54 }
  0xff   : > { %v495_v40 = vsel %vm485_vm3, nan, %v494_v32 }
 0x100   : > { %v497_v55 = vmul.f32 1.4142135, %v495_v40 }
 0x102   : > { %499 = vst [vmem:[%s975_s8 + $0x8] sm:$0xff] %v497_v55 }
 0x103   : > { %668 = shalt.err (!%p665_p3)
}
 0x104   : > { %594 = dma.vmem_to_hbm [thread:$0]  (%p770_p5), %s515_s19, 256, %s517_s20, %s501_s16  }
 0x105 PF: > { %p600_p4 = scmp.ge.s32.totalorder %s703_s15, 2  ;;  %s528_s4 = sand.u32 1, %s691_s12  }
 0x106   : > { %s529_s5 = scalar_lea.sflag [#allocation3], %s528_s4 }
 0x107   : > { %p597_p7 = pnand %p600_p4, %p774_p6 }
 0x109   : > { %p598_p8 = pneg %p597_p7 }
 0x10b   : > { %686 = dma.done.wait (%p598_p8), %s529_s5, 256  }
 0x10c   : > { %688 = vsyncadd (%p598_p8), %s529_s5, 4294967040  ;;  %p13_p9 = scmp.ge.s32.totalorder %s757_s18, 4   ;;  %s1029_s12 = smov %s695_s13 }
 0x10d   : > { %s1030_s13 = smov %s699_s14  ;;  %s1031_s14 = smov %s768_s21 }
 0x10e   : > { %s1032_s15 = smov %s757_s18  ;;  %15 = sbr.rel (!%p13_p9) target bundleno = 3 (0x3), region = 67 }
 0x113   :  { %535 = vsyncpa [#allocation3], 1 }
 0x114   :  { %537 = vsyncpa [#allocation3 + $0x1], 1 }

</bundles_post_ra>
